<compile_context>
chip_gen: v7x
topology: tpu7x:2x2x1
jax: 0.10.0
libtpu: 0.0.40
codegen_flags: <defaults>
</compile_context>

<pallas_src>
from functools import partial

import jax
import jax.numpy as jnp
from jax.experimental import pallas as pl
from jax.experimental.pallas import tpu as pltpu

FEAT = 3      # wavevector components
CHUNK = 8     # sublane rows processed per inner-loop step (one f32 vreg of sublanes)


def make_kernel(nlin, n_chunks, chunk):
    """Build the fused tauNet kernel.

    Kernel args:
      theta_ref : SMEM (nlin*12 + 1,) f32 scalar-prefetch ref
                  layout: [W0(9 row-major), b0(3), W1(9), b1(3), ..., nu]
      k_ref     : VMEM (3, block_rows, LANES) -- wavevector components
      out_ref   : VMEM (block_rows, LANES)    -- tau
    """

    def kernel(theta_ref, k_ref, out_ref):
        # Hoist all SMEM scalar loads out of the chunk loop.
        th = [theta_ref[i] for i in range(nlin * 12)]
        nu = theta_ref[nlin * 12]
        half_a = 0.5 * (nu - 2.0 / 3.0)

        @pl.loop(0, n_chunks)
        def _(c):
            r0 = pl.multiple_of(c * chunk, chunk)
            # |k| components, each a dense (chunk, LANES) plane on the VPU.
            rows = [jnp.abs(k_ref[i, pl.ds(r0, chunk), :]) for i in range(FEAT)]

            # Tiny 3->3 MLP as broadcast-FMAs (no MXU).
            for l in range(nlin):
                base = l * 12
                new_rows = []
                for j in range(FEAT):
                    acc = th[base + 3 * j] * rows[0]
                    acc = acc + th[base + 3 * j + 1] * rows[1]
                    acc = acc + th[base + 3 * j + 2] * rows[2]
                    acc = acc + th[base + 9 + j]
                    if l < nlin - 1:
                        acc = jnp.maximum(acc, 0.0)  # ReLU on hidden layers
                    new_rows.append(acc)
                rows = new_rows

            # s = ||NN(|k|)||^2 ; tau = s^(a/2) / (1+s)^(a/2) = exp(a/2 * log(s/(1+s)))
            s = rows[0] * rows[0] + rows[1] * rows[1] + rows[2] * rows[2]
            ratio = s * pl.reciprocal(1.0 + s, approx=True)
            out_ref[pl.ds(r0, chunk), :] = jnp.exp(half_a * jnp.log(ratio))

    return kernel


def _pack_theta(params, nu):
    parts = []
    for w, b in params:
        parts.append(jnp.asarray(w, jnp.float32).reshape(-1))
        parts.append(jnp.asarray(b, jnp.float32).reshape(-1))
    parts.append(jnp.asarray(nu, jnp.float32).reshape(1))
    return jnp.concatenate(parts)


@partial(jax.jit, static_argnames=("lanes", "block_rows"))
def taunet_forward(k, params, nu, *, lanes=512, block_rows=64):
    """k: (N, 3) float32 wavevectors -> tau: (N,) float32."""
    assert lanes % 128 == 0 and block_rows % CHUNK == 0
    n = k.shape[0]
    nlin = len(params)

    # Choose tiling: rows of `lanes` points; blocks of `block_rows` rows (>= CHUNK).
    rows = -(-n // lanes)
    blk = max(CHUNK, min(block_rows, ((rows + CHUNK - 1) // CHUNK) * CHUNK))
    rows_pad = ((rows + blk - 1) // blk) * blk
    n_pad = rows_pad * lanes

    # Layout plumbing (fused by jit): (N,3) -> (3, rows_pad, lanes), pad with 1.0.
    kT = jnp.asarray(k, jnp.float32).T
    kT = jnp.pad(kT, ((0, 0), (0, n_pad - n)), constant_values=1.0)
    k3 = kT.reshape(FEAT, rows_pad, lanes)

    theta = _pack_theta(params, nu)           # (nlin*12 + 1,) scalars -> SMEM

    kernel = make_kernel(nlin, blk // CHUNK, CHUNK)
    out = pl.pallas_call(
        kernel,
        out_shape=jax.ShapeDtypeStruct((rows_pad, lanes), jnp.float32),
        grid_spec=pltpu.PrefetchScalarGridSpec(
            num_scalar_prefetch=1,
            grid=(rows_pad // blk,),
            in_specs=[pl.BlockSpec((FEAT, blk, lanes), lambda i, th: (0, i, 0))],
            out_specs=pl.BlockSpec((blk, lanes), lambda i, th: (i, 0)),
        ),
        compiler_params=pltpu.CompilerParams(dimension_semantics=("parallel",)),
    )(theta, k3)

    return out.reshape(-1)[:n]


def init_taunet_params(key, nlayers=2, hidden=3):
    """Deterministic init mirroring SimpleNN(nlayers=2, inlayer=3, hlayer=3, outlayer=3)."""
    dims = [FEAT] + [hidden] * nlayers + [FEAT]
    params = []
    for i in range(len(dims) - 1):
        fan_in, fan_out = dims[i], dims[i + 1]
        key, kw, kb = jax.random.split(key, 3)
        bound = 1.0 / float(fan_in) ** 0.5
        w = jax.random.uniform(kw, (fan_out, fan_in), jnp.float32, -bound, bound)
        b = jax.random.uniform(kb, (fan_out,), jnp.float32, -bound, bound)
        params.append((w, b))
    nu = jnp.float32(-1.0 / 3.0)   # learn_nu=True -> parameter, init -1/3
    return params, nu


def taunet_reference(k, params, nu):
    """Plain-JAX reference of the same forward pass."""
    x = jnp.abs(k)
    nlin = len(params)
    for i, (w, b) in enumerate(params):
        x = x @ w.T + b
        if i < nlin - 1:
            x = jnp.maximum(x, 0.0)
    k_mod = jnp.sqrt(jnp.sum(x * x, axis=-1))
    a = nu - 2.0 / 3.0
    return jnp.power(k_mod, a) / jnp.power(1.0 + k_mod * k_mod, 0.5 * a)


if __name__ == "__main__":
    key = jax.random.PRNGKey(0)
    kp, kx = jax.random.split(key)

    params, nu = init_taunet_params(kp, nlayers=2, hidden=3)

    N = 1000  # not a multiple of the tile -> exercises the padded-tail path
    k = jax.random.normal(kx, (N, FEAT), jnp.float32) * 2.0 + 0.5

    tau = jax.block_until_ready(taunet_forward(k, params, nu))
    tau_ref = taunet_reference(k, params, nu)

    assert tau.shape == (N,)
    assert bool(jnp.all(jnp.isfinite(tau)))
    assert jnp.allclose(tau, tau_ref, rtol=1e-2, atol=1e-2), (
        float(jnp.max(jnp.abs(tau - tau_ref))))

    print("KERNEL_OK")
</pallas_src>

<mosaic_0001>
module attributes {stable_mosaic.version = 11 : i64} {
  func.func @kernel(%arg0: i32, %arg1: memref<37xf32, #tpu.memory_space<smem>>, %arg2: memref<3x8x512xf32, #tpu.memory_space<vmem>>, %arg3: memref<8x512xf32, #tpu.memory_space<vmem>>) attributes {dimension_semantics = [#tpu.dimension_semantics<parallel>], iteration_bounds = array<i64: 1>, scalar_prefetch = 1 : i64, scratch_operands = 0 : i64, tpu.core_type = #tpu.core_type<tc>, window_params = [{transform_indices = @transform_0, window_bounds = array<i64: 3, 8, 512>}, {transform_indices = @transform_1, window_bounds = array<i64: 8, 512>}]} {
    %c0 = arith.constant 0 : index
    %0 = memref.load %arg1[%c0] : memref<37xf32, #tpu.memory_space<smem>>
    %c1 = arith.constant 1 : index
    %1 = memref.load %arg1[%c1] : memref<37xf32, #tpu.memory_space<smem>>
    %c2 = arith.constant 2 : index
    %2 = memref.load %arg1[%c2] : memref<37xf32, #tpu.memory_space<smem>>
    %c3 = arith.constant 3 : index
    %3 = memref.load %arg1[%c3] : memref<37xf32, #tpu.memory_space<smem>>
    %c4 = arith.constant 4 : index
    %4 = memref.load %arg1[%c4] : memref<37xf32, #tpu.memory_space<smem>>
    %c5 = arith.constant 5 : index
    %5 = memref.load %arg1[%c5] : memref<37xf32, #tpu.memory_space<smem>>
    %c6 = arith.constant 6 : index
    %6 = memref.load %arg1[%c6] : memref<37xf32, #tpu.memory_space<smem>>
    %c7 = arith.constant 7 : index
    %7 = memref.load %arg1[%c7] : memref<37xf32, #tpu.memory_space<smem>>
    %c8 = arith.constant 8 : index
    %8 = memref.load %arg1[%c8] : memref<37xf32, #tpu.memory_space<smem>>
    %c9 = arith.constant 9 : index
    %9 = memref.load %arg1[%c9] : memref<37xf32, #tpu.memory_space<smem>>
    %c10 = arith.constant 10 : index
    %10 = memref.load %arg1[%c10] : memref<37xf32, #tpu.memory_space<smem>>
    %c11 = arith.constant 11 : index
    %11 = memref.load %arg1[%c11] : memref<37xf32, #tpu.memory_space<smem>>
    %c12 = arith.constant 12 : index
    %12 = memref.load %arg1[%c12] : memref<37xf32, #tpu.memory_space<smem>>
    %c13 = arith.constant 13 : index
    %13 = memref.load %arg1[%c13] : memref<37xf32, #tpu.memory_space<smem>>
    %c14 = arith.constant 14 : index
    %14 = memref.load %arg1[%c14] : memref<37xf32, #tpu.memory_space<smem>>
    %c15 = arith.constant 15 : index
    %15 = memref.load %arg1[%c15] : memref<37xf32, #tpu.memory_space<smem>>
    %c16 = arith.constant 16 : index
    %16 = memref.load %arg1[%c16] : memref<37xf32, #tpu.memory_space<smem>>
    %c17 = arith.constant 17 : index
    %17 = memref.load %arg1[%c17] : memref<37xf32, #tpu.memory_space<smem>>
    %c18 = arith.constant 18 : index
    %18 = memref.load %arg1[%c18] : memref<37xf32, #tpu.memory_space<smem>>
    %c19 = arith.constant 19 : index
    %19 = memref.load %arg1[%c19] : memref<37xf32, #tpu.memory_space<smem>>
    %c20 = arith.constant 20 : index
    %20 = memref.load %arg1[%c20] : memref<37xf32, #tpu.memory_space<smem>>
    %c21 = arith.constant 21 : index
    %21 = memref.load %arg1[%c21] : memref<37xf32, #tpu.memory_space<smem>>
    %c22 = arith.constant 22 : index
    %22 = memref.load %arg1[%c22] : memref<37xf32, #tpu.memory_space<smem>>
    %c23 = arith.constant 23 : index
    %23 = memref.load %arg1[%c23] : memref<37xf32, #tpu.memory_space<smem>>
    %c24 = arith.constant 24 : index
    %24 = memref.load %arg1[%c24] : memref<37xf32, #tpu.memory_space<smem>>
    %c25 = arith.constant 25 : index
    %25 = memref.load %arg1[%c25] : memref<37xf32, #tpu.memory_space<smem>>
    %c26 = arith.constant 26 : index
    %26 = memref.load %arg1[%c26] : memref<37xf32, #tpu.memory_space<smem>>
    %c27 = arith.constant 27 : index
    %27 = memref.load %arg1[%c27] : memref<37xf32, #tpu.memory_space<smem>>
    %c28 = arith.constant 28 : index
    %28 = memref.load %arg1[%c28] : memref<37xf32, #tpu.memory_space<smem>>
    %c29 = arith.constant 29 : index
    %29 = memref.load %arg1[%c29] : memref<37xf32, #tpu.memory_space<smem>>
    %c30 = arith.constant 30 : index
    %30 = memref.load %arg1[%c30] : memref<37xf32, #tpu.memory_space<smem>>
    %c31 = arith.constant 31 : index
    %31 = memref.load %arg1[%c31] : memref<37xf32, #tpu.memory_space<smem>>
    %c32 = arith.constant 32 : index
    %32 = memref.load %arg1[%c32] : memref<37xf32, #tpu.memory_space<smem>>
    %c33 = arith.constant 33 : index
    %33 = memref.load %arg1[%c33] : memref<37xf32, #tpu.memory_space<smem>>
    %c34 = arith.constant 34 : index
    %34 = memref.load %arg1[%c34] : memref<37xf32, #tpu.memory_space<smem>>
    %c35 = arith.constant 35 : index
    %35 = memref.load %arg1[%c35] : memref<37xf32, #tpu.memory_space<smem>>
    %c36 = arith.constant 36 : index
    %36 = memref.load %arg1[%c36] : memref<37xf32, #tpu.memory_space<smem>>
    %cst = arith.constant 0.666666686 : f32
    %37 = arith.subf %36, %cst : f32
    %cst_0 = arith.constant 5.000000e-01 : f32
    %38 = arith.mulf %cst_0, %37 : f32
    %c0_i32 = arith.constant 0 : i32
    %c1_i32 = arith.constant 1 : i32
    %39 = arith.muli %c0_i32, %c1_i32 : i32
    %c0_i32_1 = arith.constant 0 : i32
    %40 = arith.addi %c0_i32_1, %39 : i32
    %c8_i32 = arith.constant 8 : i32
    %41 = arith.muli %40, %c8_i32 : i32
    %42 = tpu.assume_multiple %41, 8 : i32
    %c0_2 = arith.constant 0 : index
    %43 = arith.index_cast %42 : i32 to index
    %c0_3 = arith.constant 0 : index
    %44 = vector.load %arg2[%c0_2, %43, %c0_3] : memref<3x8x512xf32, #tpu.memory_space<vmem>>, vector<1x8x512xf32>
    %45 = vector.shape_cast %44 : vector<1x8x512xf32> to vector<8x512xf32>
    %46 = math.absf %45 : vector<8x512xf32>
    %c1_4 = arith.constant 1 : index
    %47 = arith.index_cast %42 : i32 to index
    %c0_5 = arith.constant 0 : index
    %48 = vector.load %arg2[%c1_4, %47, %c0_5] : memref<3x8x512xf32, #tpu.memory_space<vmem>>, vector<1x8x512xf32>
    %49 = vector.shape_cast %48 : vector<1x8x512xf32> to vector<8x512xf32>
    %50 = math.absf %49 : vector<8x512xf32>
    %c2_6 = arith.constant 2 : index
    %51 = arith.index_cast %42 : i32 to index
    %c0_7 = arith.constant 0 : index
    %52 = vector.load %arg2[%c2_6, %51, %c0_7] : memref<3x8x512xf32, #tpu.memory_space<vmem>>, vector<1x8x512xf32>
    %53 = vector.shape_cast %52 : vector<1x8x512xf32> to vector<8x512xf32>
    %54 = math.absf %53 : vector<8x512xf32>
    %55 = vector.broadcast %0 : f32 to vector<8x512xf32>
    %56 = arith.mulf %55, %46 : vector<8x512xf32>
    %57 = vector.broadcast %1 : f32 to vector<8x512xf32>
    %58 = arith.mulf %57, %50 : vector<8x512xf32>
    %59 = arith.addf %56, %58 : vector<8x512xf32>
    %60 = vector.broadcast %2 : f32 to vector<8x512xf32>
    %61 = arith.mulf %60, %54 : vector<8x512xf32>
    %62 = arith.addf %59, %61 : vector<8x512xf32>
    %63 = vector.broadcast %9 : f32 to vector<8x512xf32>
    %64 = arith.addf %62, %63 : vector<8x512xf32>
    %cst_8 = arith.constant 0.000000e+00 : f32
    %65 = vector.broadcast %cst_8 : f32 to vector<8x512xf32>
    %66 = arith.maximumf %64, %65 : vector<8x512xf32>
    %67 = vector.broadcast %3 : f32 to vector<8x512xf32>
    %68 = arith.mulf %67, %46 : vector<8x512xf32>
    %69 = vector.broadcast %4 : f32 to vector<8x512xf32>
    %70 = arith.mulf %69, %50 : vector<8x512xf32>
    %71 = arith.addf %68, %70 : vector<8x512xf32>
    %72 = vector.broadcast %5 : f32 to vector<8x512xf32>
    %73 = arith.mulf %72, %54 : vector<8x512xf32>
    %74 = arith.addf %71, %73 : vector<8x512xf32>
    %75 = vector.broadcast %10 : f32 to vector<8x512xf32>
    %76 = arith.addf %74, %75 : vector<8x512xf32>
    %cst_9 = arith.constant 0.000000e+00 : f32
    %77 = vector.broadcast %cst_9 : f32 to vector<8x512xf32>
    %78 = arith.maximumf %76, %77 : vector<8x512xf32>
    %79 = vector.broadcast %6 : f32 to vector<8x512xf32>
    %80 = arith.mulf %79, %46 : vector<8x512xf32>
    %81 = vector.broadcast %7 : f32 to vector<8x512xf32>
    %82 = arith.mulf %81, %50 : vector<8x512xf32>
    %83 = arith.addf %80, %82 : vector<8x512xf32>
    %84 = vector.broadcast %8 : f32 to vector<8x512xf32>
    %85 = arith.mulf %84, %54 : vector<8x512xf32>
    %86 = arith.addf %83, %85 : vector<8x512xf32>
    %87 = vector.broadcast %11 : f32 to vector<8x512xf32>
    %88 = arith.addf %86, %87 : vector<8x512xf32>
    %cst_10 = arith.constant 0.000000e+00 : f32
    %89 = vector.broadcast %cst_10 : f32 to vector<8x512xf32>
    %90 = arith.maximumf %88, %89 : vector<8x512xf32>
    %91 = vector.broadcast %12 : f32 to vector<8x512xf32>
    %92 = arith.mulf %91, %66 : vector<8x512xf32>
    %93 = vector.broadcast %13 : f32 to vector<8x512xf32>
    %94 = arith.mulf %93, %78 : vector<8x512xf32>
    %95 = arith.addf %92, %94 : vector<8x512xf32>
    %96 = vector.broadcast %14 : f32 to vector<8x512xf32>
    %97 = arith.mulf %96, %90 : vector<8x512xf32>
    %98 = arith.addf %95, %97 : vector<8x512xf32>
    %99 = vector.broadcast %21 : f32 to vector<8x512xf32>
    %100 = arith.addf %98, %99 : vector<8x512xf32>
    %cst_11 = arith.constant 0.000000e+00 : f32
    %101 = vector.broadcast %cst_11 : f32 to vector<8x512xf32>
    %102 = arith.maximumf %100, %101 : vector<8x512xf32>
    %103 = vector.broadcast %15 : f32 to vector<8x512xf32>
    %104 = arith.mulf %103, %66 : vector<8x512xf32>
    %105 = vector.broadcast %16 : f32 to vector<8x512xf32>
    %106 = arith.mulf %105, %78 : vector<8x512xf32>
    %107 = arith.addf %104, %106 : vector<8x512xf32>
    %108 = vector.broadcast %17 : f32 to vector<8x512xf32>
    %109 = arith.mulf %108, %90 : vector<8x512xf32>
    %110 = arith.addf %107, %109 : vector<8x512xf32>
    %111 = vector.broadcast %22 : f32 to vector<8x512xf32>
    %112 = arith.addf %110, %111 : vector<8x512xf32>
    %cst_12 = arith.constant 0.000000e+00 : f32
    %113 = vector.broadcast %cst_12 : f32 to vector<8x512xf32>
    %114 = arith.maximumf %112, %113 : vector<8x512xf32>
    %115 = vector.broadcast %18 : f32 to vector<8x512xf32>
    %116 = arith.mulf %115, %66 : vector<8x512xf32>
    %117 = vector.broadcast %19 : f32 to vector<8x512xf32>
    %118 = arith.mulf %117, %78 : vector<8x512xf32>
    %119 = arith.addf %116, %118 : vector<8x512xf32>
    %120 = vector.broadcast %20 : f32 to vector<8x512xf32>
    %121 = arith.mulf %120, %90 : vector<8x512xf32>
    %122 = arith.addf %119, %121 : vector<8x512xf32>
    %123 = vector.broadcast %23 : f32 to vector<8x512xf32>
    %124 = arith.addf %122, %123 : vector<8x512xf32>
    %cst_13 = arith.constant 0.000000e+00 : f32
    %125 = vector.broadcast %cst_13 : f32 to vector<8x512xf32>
    %126 = arith.maximumf %124, %125 : vector<8x512xf32>
    %127 = vector.broadcast %24 : f32 to vector<8x512xf32>
    %128 = arith.mulf %127, %102 : vector<8x512xf32>
    %129 = vector.broadcast %25 : f32 to vector<8x512xf32>
    %130 = arith.mulf %129, %114 : vector<8x512xf32>
    %131 = arith.addf %128, %130 : vector<8x512xf32>
    %132 = vector.broadcast %26 : f32 to vector<8x512xf32>
    %133 = arith.mulf %132, %126 : vector<8x512xf32>
    %134 = arith.addf %131, %133 : vector<8x512xf32>
    %135 = vector.broadcast %33 : f32 to vector<8x512xf32>
    %136 = arith.addf %134, %135 : vector<8x512xf32>
    %137 = vector.broadcast %27 : f32 to vector<8x512xf32>
    %138 = arith.mulf %137, %102 : vector<8x512xf32>
    %139 = vector.broadcast %28 : f32 to vector<8x512xf32>
    %140 = arith.mulf %139, %114 : vector<8x512xf32>
    %141 = arith.addf %138, %140 : vector<8x512xf32>
    %142 = vector.broadcast %29 : f32 to vector<8x512xf32>
    %143 = arith.mulf %142, %126 : vector<8x512xf32>
    %144 = arith.addf %141, %143 : vector<8x512xf32>
    %145 = vector.broadcast %34 : f32 to vector<8x512xf32>
    %146 = arith.addf %144, %145 : vector<8x512xf32>
    %147 = vector.broadcast %30 : f32 to vector<8x512xf32>
    %148 = arith.mulf %147, %102 : vector<8x512xf32>
    %149 = vector.broadcast %31 : f32 to vector<8x512xf32>
    %150 = arith.mulf %149, %114 : vector<8x512xf32>
    %151 = arith.addf %148, %150 : vector<8x512xf32>
    %152 = vector.broadcast %32 : f32 to vector<8x512xf32>
    %153 = arith.mulf %152, %126 : vector<8x512xf32>
    %154 = arith.addf %151, %153 : vector<8x512xf32>
    %155 = vector.broadcast %35 : f32 to vector<8x512xf32>
    %156 = arith.addf %154, %155 : vector<8x512xf32>
    %157 = arith.mulf %136, %136 : vector<8x512xf32>
    %158 = arith.mulf %146, %146 : vector<8x512xf32>
    %159 = arith.addf %157, %158 : vector<8x512xf32>
    %160 = arith.mulf %156, %156 : vector<8x512xf32>
    %161 = arith.addf %159, %160 : vector<8x512xf32>
    %cst_14 = arith.constant 1.000000e+00 : f32
    %162 = vector.broadcast %cst_14 : f32 to vector<8x512xf32>
    %163 = arith.addf %162, %161 : vector<8x512xf32>
    %164 = tpu.reciprocal %163 {approx = true} : vector<8x512xf32> -> vector<8x512xf32>
    %165 = arith.mulf %161, %164 : vector<8x512xf32>
    %166 = math.log %165 : vector<8x512xf32>
    %167 = vector.broadcast %38 : f32 to vector<8x512xf32>
    %168 = arith.mulf %167, %166 : vector<8x512xf32>
    %169 = math.exp %168 : vector<8x512xf32>
    %170 = arith.index_cast %42 : i32 to index
    %c0_15 = arith.constant 0 : index
    %171 = vector.load %arg3[%170, %c0_15] : memref<8x512xf32, #tpu.memory_space<vmem>>, vector<8x512xf32>
    tpu.vector_store %arg3[%170, %c0_15], %169 {strides = array<i32>} : memref<8x512xf32, #tpu.memory_space<vmem>>, vector<8x512xf32>,
    %c1_i32_16 = arith.constant 1 : i32
    return
  }
  func.func @transform_0(%arg0: i32, %arg1: memref<37xf32, #tpu.memory_space<smem>>) -> (i32, i32, i32) {
    %c0_i32 = arith.constant 0 : i32
    %c0_i32_0 = arith.constant 0 : i32
    %c0_i32_1 = arith.constant 0 : i32
    return %c0_i32, %arg0, %c0_i32_0 : i32, i32, i32
  }
  func.func @transform_1(%arg0: i32, %arg1: memref<37xf32, #tpu.memory_space<smem>>) -> (i32, i32) {
    %c0_i32 = arith.constant 0 : i32
    %c0_i32_0 = arith.constant 0 : i32
    return %arg0, %c0_i32 : i32, i32
  }
}

</mosaic_0001>

<bundles_post_ra>
// kernel: taunet_forward.1
= control target key start
LH: loop header
LB: loop body
LE: loop exit
PB: predicated region body
PF: predicated region fallthrough
CT: control target
= control target key end

     0   :  { %s839_s0 = inlined_call_operand.vmem [shape: f32[37], index: 0, kind: input, shape index: {}]   ;;  %s840_s1 = inlined_call_operand.vmem [shape: f32[3,8,512], index: 1, kind: input, shape index: {}]   ;;  %s841_s2 = inlined_call_operand.vmem [shape: f32[8,512], index: 2, kind: output, shape index: {}]  }
   0x1   :  { %s7_s11 = sshll.u32 %s839_s0, 4  ;;  %s8_s11 = int_to_ptr.vmem [resolvable:$true] %s7_s11 }
   0x2   :  { %s498_s12 = scalar_lea.vmem %s8_s11, 16  ;;  %p503_p1 = scmp.lt.s32.totalorder %s8_s11, %s8_s11 }
   0x3   :  { %p499_p0 = scmp.ne.s32.totalorder %s8_s11, %s498_s12  ;;  %p504_p2 = scmp.lt.s32.totalorder %s498_s12, %s498_s12 }
   0x5   :  { %p505_p3 = por %p504_p2, %p503_p1 }
   0x7   :  { %p506_p4 = pnand %p505_p3, %p499_p0 }
   0x9   :  { %509 = shalt.err (!%p506_p4)  }
   0xa   :  { %s512_s13 = smov [#allocation3]  }
   0xb   :  { %10 = dma.vmem_to_smem %s8_s11, 16, %s512_s13, [#allocation2] }
   0xc   :  { %510 = dma.done.wait [#allocation2], 16 }
   0xd   :  { %511 = vsyncadd [#allocation2], 4294967280 }
   0xe   :  { %12 = sfence }
   0xf   :  { %s15_s14 = sld [smem:[#allocation3]]  ;;  %s428_s15 = sld [smem:[#allocation3 + $0x1]]  ;;  %v57_v0 = vld [vmem:[%s840_s1] sm:$0xff]  ;;  %v58_v1 = vld [vmem:[%s840_s1 + $0x8] sm:$0xff]  ;;  %v59_v2 = vld [vmem:[%s840_s1 + $0x10] sm:$0xff] }
  0x10   :  { %s429_s19 = sld [smem:[#allocation3 + $0x2]]  ;;  %s430_s20 = sld [smem:[#allocation3 + $0x3]]  ;;  %v60_v3 = vld [vmem:[%s840_s1 + $0x18] sm:$0xff]  ;;  %v61_v4 = vand.u32 2147483647, %v57_v0  ;;  %v465_v8 = vld [vmem:[%s840_s1 + $0x20] sm:$0xff] }
  0x11   :  { %s431_s23 = sld [smem:[#allocation3 + $0x4]]  ;;  %v543_v5 = vand.u32 2147483647, %v58_v1  ;;  %s545_s26 = sld [smem:[#allocation3 + $0x5]]  ;;  %v547_v6 = vand.u32 2147483647, %v59_v2 }
  0x12   :  { %s436_s27 = sld [smem:[#allocation3 + $0x9]]  ;;  %v549_v7 = vand.u32 2147483647, %v60_v3  ;;  %v466_v9 = vld [vmem:[%s840_s1 + $0x28] sm:$0xff]  ;;  %s557_s4 = sld [smem:[#allocation3 + $0xa]]  ;;  %v467_v12 = vld [vmem:[%s840_s1 + $0x30] sm:$0xff] }
  0x13   :  { %s565_s7 = sld [smem:[#allocation3 + $0x6]]  ;;  %v468_v17 = vld [vmem:[%s840_s1 + $0x38] sm:$0xff]  ;;  %v570_v18 = vand.u32 2147483647, %v465_v8  ;;  %v572_v22 = vand.u32 2147483647, %v466_v9 }
  0x14   :  { %v576_v26 = vand.u32 2147483647, %v467_v12  ;;  %v580_v30 = vand.u32 2147483647, %v468_v17  ;;  %v469_v34 = vld [vmem:[%s840_s1 + $0x40] sm:$0xff]  ;;  %v470_v35 = vld [vmem:[%s840_s1 + $0x48] sm:$0xff] }
  0x15   :  { %v87_v10 = vstv %s15_s14  ;;  %v92_v11 = vstv %s428_s15  ;;  %v471_v40 = vld [vmem:[%s840_s1 + $0x50] sm:$0xff]  ;;  %v472_v45 = vld [vmem:[%s840_s1 + $0x58] sm:$0xff]  ;;  %v602_v46 = vand.u32 2147483647, %v469_v34  ;;  %v604_v50 = vand.u32 2147483647, %v470_v35 }
  0x16   :  { %v88_v13 = vmul.f32 %v87_v10, %v61_v4  ;;  %v89_v14 = vmul.f32 %v87_v10, %v543_v5  ;;  %v90_v15 = vmul.f32 %v87_v10, %v547_v6  ;;  %v91_v16 = vmul.f32 %v87_v10, %v549_v7  ;;  %s612_s0 = sld [smem:[#allocation3 + $0x7]]  ;;  %s616_s1 = sld [smem:[#allocation3 + $0x8]] }
  0x17   :  { %v101_v19 = vstv %s429_s19  ;;  %v119_v20 = vstv %s430_s20  ;;  %v124_v21 = vstv %s431_s23  ;;  %v93_v27 = vmul.f32 %v92_v11, %v570_v18  ;;  %s618_s18 = sld [smem:[#allocation3 + $0xb]]  ;;  %s622_s19 = sld [smem:[#allocation3 + $0xc]] }
  0x18   :  { %v120_v23 = vmul.f32 %v119_v20, %v61_v4  ;;  %v121_v24 = vmul.f32 %v119_v20, %v543_v5  ;;  %v122_v25 = vmul.f32 %v119_v20, %v547_v6  ;;  %v110_v28 = vstv %s436_s27  ;;  %s624_s20 = sld [smem:[#allocation3 + $0xd]]  ;;  %s650_s21 = sld [smem:[#allocation3 + $0xe]] }
  0x19   :  { %v123_v29 = vmul.f32 %v119_v20, %v549_v7  ;;  %v94_v31 = vmul.f32 %v92_v11, %v572_v22  ;;  %v125_v32 = vmul.f32 %v124_v21, %v570_v18  ;;  %v126_v33 = vmul.f32 %v124_v21, %v572_v22  ;;  %s652_s22 = sld [smem:[#allocation3 + $0xf]]  ;;  %s658_s23 = sld [smem:[#allocation3 + $0x10]] }
  0x1a   :  { %v95_v36 = vmul.f32 %v92_v11, %v576_v26  ;;  %v97_v37 = vadd.f32 %v93_v27, %v88_v13  ;;  %v127_v38 = vmul.f32 %v124_v21, %v576_v26  ;;  %v133_v39 = vstv %s545_s26  ;;  %s660_s24 = sld [smem:[#allocation3 + $0x15]]  ;;  %s673_s25 = sld [smem:[#allocation3 + $0x11]] }
  0x1b   :  { %v96_v41 = vmul.f32 %v92_v11, %v580_v30  ;;  %v98_v42 = vadd.f32 %v94_v31, %v89_v14  ;;  %v128_v43 = vmul.f32 %v124_v21, %v580_v30  ;;  %v129_v44 = vadd.f32 %v125_v32, %v120_v23  ;;  %s675_s26 = sld [smem:[#allocation3 + $0x12]]  ;;  %s685_s27 = sld [smem:[#allocation3 + $0x13]] }
  0x1c   :  { %v99_v47 = vadd.f32 %v95_v36, %v90_v15  ;;  %v130_v48 = vadd.f32 %v126_v33, %v121_v24  ;;  %v131_v49 = vadd.f32 %v127_v38, %v122_v25  ;;  %v142_v53 = vstv %s557_s4  ;;  %s687_s28 = sld [smem:[#allocation3 + $0x16]]  ;;  %s705_s29 = sld [smem:[#allocation3 + $0x14]] }
  0x1d   :  { %v100_v51 = vadd.f32 %v96_v41, %v91_v16  ;;  %v132_v52 = vadd.f32 %v128_v43, %v123_v29  ;;  %v607_v54 = vand.u32 2147483647, %v471_v40  ;;  %v102_v55 = vmul.f32 %v101_v19, %v602_v46  ;;  %s707_s30 = sld [smem:[#allocation3 + $0x17]]  ;;  %s717_s3 = sld [smem:[#allocation3 + $0x18]] }
  0x1e   :  { %v134_v56 = vmul.f32 %v133_v39, %v602_v46  ;;  %v151_v57 = vstv %s565_s7  ;;  %v86_v58 = vand.u32 2147483647, %v472_v45  ;;  %v103_v59 = vmul.f32 %v101_v19, %v604_v50  ;;  %s719_s4 = sld [smem:[#allocation3 + $0x19]]  ;;  %s737_s5 = sld [smem:[#allocation3 + $0x1a]] }
  0x1f   :  { %v135_v60 = vmul.f32 %v133_v39, %v604_v50  ;;  %v152_v61 = vmul.f32 %v151_v57, %v61_v4  ;;  %v104_v62 = vmul.f32 %v101_v19, %v607_v54  ;;  %v106_v63 = vadd.f32 %v102_v55, %v97_v37  ;;  %s739_s6 = sld [smem:[#allocation3 + $0x1b]]  ;;  %s749_s7 = sld [smem:[#allocation3 + $0x1c]] }
  0x20   :  { %v136_v0 = vmul.f32 %v133_v39, %v607_v54  ;;  %v138_v1 = vadd.f32 %v134_v56, %v129_v44  ;;  %v105_v2 = vmul.f32 %v101_v19, %v86_v58  ;;  %v107_v3 = vadd.f32 %v103_v59, %v98_v42  ;;  %s751_s8 = sld [smem:[#allocation3 + $0x21]]  ;;  %s769_s9 = sld [smem:[#allocation3 + $0x1d]] }
  0x21   :  { %v137_v8 = vmul.f32 %v133_v39, %v86_v58  ;;  %v139_v9 = vadd.f32 %v135_v60, %v130_v48  ;;  %v108_v10 = vadd.f32 %v104_v62, %v99_v47  ;;  %v111_v4 = vadd.f32 %v110_v28, %v106_v63  ;;  %s771_s10 = sld [smem:[#allocation3 + $0x1e]]  ;;  %s773_s11 = sld [smem:[#allocation3 + $0x1f]] }
  0x22   :  { %v140_v11 = vadd.f32 %v136_v0, %v131_v49  ;;  %v143_v12 = vadd.f32 %v142_v53, %v138_v1  ;;  %v109_v13 = vadd.f32 %v105_v2, %v100_v51  ;;  %v112_v14 = vadd.f32 %v110_v28, %v107_v3  ;;  %s775_s12 = sld [smem:[#allocation3 + $0x22]]  ;;  %s801_s13 = sld [smem:[#allocation3 + $0x20]] }
  0x23   :  { %v141_v15 = vadd.f32 %v137_v8, %v132_v52  ;;  %v144_v16 = vadd.f32 %v142_v53, %v139_v9  ;;  %v113_v17 = vadd.f32 %v110_v28, %v108_v10  ;;  %v626_v20 = vmax.f32 %v111_v4, 0.0  ;;  %s803_s14 = sld [smem:[#allocation3 + $0x23]]  ;;  %s463_s15 = sld [smem:[#allocation3 + $0x24]] }
  0x24   :  { %v145_v21 = vadd.f32 %v142_v53, %v140_v11  ;;  %v628_v23 = vmax.f32 %v143_v12, 0.0  ;;  %v114_v24 = vadd.f32 %v110_v28, %v109_v13  ;;  %v630_v19 = vmax.f32 %v112_v14, 0.0 }
  0x25   :  { %v146_v25 = vadd.f32 %v142_v53, %v141_v15  ;;  %v632_v27 = vmax.f32 %v144_v16, 0.0  ;;  %v634_v29 = vmax.f32 %v113_v17, 0.0  ;;  %v153_v32 = vmul.f32 %v151_v57, %v543_v5 }
  0x26   :  { %v636_v31 = vmax.f32 %v145_v21, 0.0  ;;  %v154_v33 = vmul.f32 %v151_v57, %v547_v6  ;;  %v640_v34 = vmax.f32 %v114_v24, 0.0  ;;  %v155_v35 = vmul.f32 %v151_v57, %v549_v7 }
  0x27   :  { %v642_v28 = vmax.f32 %v146_v25, 0.0  ;;  %v156_v36 = vstv %s612_s0  ;;  %v165_v5 = vstv %s616_s1  ;;  %v174_v6 = vstv %s618_s18 }
  0x28   :  { %v157_v37 = vmul.f32 %v156_v36, %v570_v18  ;;  %v158_v38 = vmul.f32 %v156_v36, %v572_v22  ;;  %v159_v39 = vmul.f32 %v156_v36, %v576_v26  ;;  %v160_v40 = vmul.f32 %v156_v36, %v580_v30 }
  0x29   :  { %v183_v41 = vstv %s622_s19  ;;  %v188_v42 = vstv %s624_s20  ;;  %v166_v26 = vmul.f32 %v165_v5, %v602_v46  ;;  %v167_v30 = vmul.f32 %v165_v5, %v604_v50  ;;  %s464_s16 = sadd.f32 -0.6666667, %s463_s15 }
  0x2a   :  { %v161_v7 = vadd.f32 %v157_v37, %v152_v61  ;;  %v162_v18 = vadd.f32 %v158_v38, %v153_v32  ;;  %v163_v43 = vadd.f32 %v159_v39, %v154_v33  ;;  %v164_v22 = vadd.f32 %v160_v40, %v155_v35 }
  0x2b   :  { %v168_v44 = vmul.f32 %v165_v5, %v607_v54  ;;  %v169_v45 = vmul.f32 %v165_v5, %v86_v58  ;;  %v184_v47 = vmul.f32 %v183_v41, %v626_v20  ;;  %v185_v48 = vmul.f32 %v183_v41, %v630_v19  ;;  %s53_s17 = smul.f32 0.5, %s464_s16 }
  0x2c   :  { %v186_v49 = vmul.f32 %v183_v41, %v634_v29  ;;  %v187_v51 = vmul.f32 %v183_v41, %v640_v34  ;;  %v170_v52 = vadd.f32 %v166_v26, %v161_v7  ;;  %v171_v53 = vadd.f32 %v167_v30, %v162_v18 }
  0x2d   :  { %v172_v55 = vadd.f32 %v168_v44, %v163_v43  ;;  %v173_v56 = vadd.f32 %v169_v45, %v164_v22  ;;  %v189_v57 = vmul.f32 %v188_v42, %v628_v23  ;;  %v190_v46 = vmul.f32 %v188_v42, %v632_v27 }
  0x2e   :  { %v191_v50 = vmul.f32 %v188_v42, %v636_v31  ;;  %v192_v54 = vmul.f32 %v188_v42, %v642_v28  ;;  %v175_v58 = vadd.f32 %v174_v6, %v170_v52  ;;  %v176_v59 = vadd.f32 %v174_v6, %v171_v53 }
  0x2f   :  { %v177_v60 = vadd.f32 %v174_v6, %v172_v55  ;;  %v178_v61 = vadd.f32 %v174_v6, %v173_v56  ;;  %v193_v62 = vadd.f32 %v189_v57, %v184_v47  ;;  %v194_v63 = vadd.f32 %v190_v46, %v185_v48 }
  0x30   :  { %v195_v0 = vadd.f32 %v191_v50, %v186_v49  ;;  %v196_v1 = vadd.f32 %v192_v54, %v187_v51  ;;  %v677_v2 = vmax.f32 %v175_v58, 0.0  ;;  %v679_v3 = vmax.f32 %v176_v59, 0.0 }
  0x31   :  { %v681_v8 = vmax.f32 %v177_v60, 0.0  ;;  %v683_v9 = vmax.f32 %v178_v61, 0.0  ;;  %v197_v10 = vstv %s650_s21  ;;  %v206_v4 = vstv %s660_s24 }
  0x32   :  { %v215_v11 = vstv %s652_s22  ;;  %v220_v12 = vstv %s658_s23  ;;  %v198_v13 = vmul.f32 %v197_v10, %v677_v2  ;;  %v199_v14 = vmul.f32 %v197_v10, %v679_v3 }
  0x33   :  { %v200_v15 = vmul.f32 %v197_v10, %v681_v8  ;;  %v201_v16 = vmul.f32 %v197_v10, %v683_v9  ;;  %v216_v17 = vmul.f32 %v215_v11, %v626_v20  ;;  %v217_v21 = vmul.f32 %v215_v11, %v630_v19 }
  0x34   :  { %v218_v24 = vmul.f32 %v215_v11, %v634_v29  ;;  %v219_v25 = vmul.f32 %v215_v11, %v640_v34  ;;  %v202_v32 = vadd.f32 %v198_v13, %v193_v62  ;;  %v203_v33 = vadd.f32 %v199_v14, %v194_v63 }
  0x35   :  { %v204_v35 = vadd.f32 %v200_v15, %v195_v0  ;;  %v205_v36 = vadd.f32 %v201_v16, %v196_v1  ;;  %v221_v37 = vmul.f32 %v220_v12, %v628_v23  ;;  %v222_v38 = vmul.f32 %v220_v12, %v632_v27 }
  0x36   :  { %v223_v39 = vmul.f32 %v220_v12, %v636_v31  ;;  %v224_v40 = vmul.f32 %v220_v12, %v642_v28  ;;  %v207_v5 = vadd.f32 %v206_v4, %v202_v32  ;;  %v208_v6 = vadd.f32 %v206_v4, %v203_v33 }
  0x37   :  { %v209_v41 = vadd.f32 %v206_v4, %v204_v35  ;;  %v210_v42 = vadd.f32 %v206_v4, %v205_v36  ;;  %v225_v7 = vadd.f32 %v221_v37, %v216_v17  ;;  %v226_v18 = vadd.f32 %v222_v38, %v217_v21 }
  0x38   :  { %v227_v43 = vadd.f32 %v223_v39, %v218_v24  ;;  %v228_v22 = vadd.f32 %v224_v40, %v219_v25  ;;  %v709_v26 = vmax.f32 %v207_v5, 0.0  ;;  %v711_v30 = vmax.f32 %v208_v6, 0.0 }
  0x39   :  { %v713_v44 = vmax.f32 %v209_v41, 0.0  ;;  %v715_v45 = vmax.f32 %v210_v42, 0.0  ;;  %v229_v47 = vstv %s673_s25  ;;  %v238_v48 = vstv %s687_s28 }
  0x3a   :  { %v247_v49 = vstv %s675_s26  ;;  %v252_v51 = vstv %s685_s27  ;;  %v230_v52 = vmul.f32 %v229_v47, %v677_v2  ;;  %v231_v53 = vmul.f32 %v229_v47, %v679_v3 }
  0x3b   :  { %v232_v55 = vmul.f32 %v229_v47, %v681_v8  ;;  %v233_v56 = vmul.f32 %v229_v47, %v683_v9  ;;  %v248_v57 = vmul.f32 %v247_v49, %v626_v20  ;;  %v249_v46 = vmul.f32 %v247_v49, %v630_v19 }
  0x3c   :  { %v250_v50 = vmul.f32 %v247_v49, %v634_v29  ;;  %v251_v54 = vmul.f32 %v247_v49, %v640_v34  ;;  %v234_v58 = vadd.f32 %v230_v52, %v225_v7  ;;  %v235_v59 = vadd.f32 %v231_v53, %v226_v18 }
  0x3d   :  { %v236_v60 = vadd.f32 %v232_v55, %v227_v43  ;;  %v237_v61 = vadd.f32 %v233_v56, %v228_v22  ;;  %v253_v62 = vmul.f32 %v252_v51, %v628_v23  ;;  %v254_v63 = vmul.f32 %v252_v51, %v632_v27 }
  0x3e   :  { %v255_v0 = vmul.f32 %v252_v51, %v636_v31  ;;  %v256_v1 = vmul.f32 %v252_v51, %v642_v28  ;;  %v239_v10 = vadd.f32 %v238_v48, %v234_v58  ;;  %v240_v20 = vadd.f32 %v238_v48, %v235_v59 }
  0x3f   :  { %v241_v19 = vadd.f32 %v238_v48, %v236_v60  ;;  %v242_v29 = vadd.f32 %v238_v48, %v237_v61  ;;  %v257_v34 = vadd.f32 %v253_v62, %v248_v57  ;;  %v258_v4 = vadd.f32 %v254_v63, %v249_v46 }
  0x40   :  { %v259_v11 = vadd.f32 %v255_v0, %v250_v50  ;;  %v260_v23 = vadd.f32 %v256_v1, %v251_v54  ;;  %v741_v27 = vmax.f32 %v239_v10, 0.0  ;;  %v743_v31 = vmax.f32 %v240_v20, 0.0 }
  0x41   :  { %v745_v28 = vmax.f32 %v241_v19, 0.0  ;;  %v747_v12 = vmax.f32 %v242_v29, 0.0  ;;  %v261_v13 = vstv %s705_s29  ;;  %v270_v14 = vstv %s707_s30 }
  0x42   :  { %v279_v15 = vstv %s717_s3  ;;  %v284_v16 = vstv %s719_s4  ;;  %v262_v17 = vmul.f32 %v261_v13, %v677_v2  ;;  %v263_v21 = vmul.f32 %v261_v13, %v679_v3 }
  0x43   :  { %v264_v24 = vmul.f32 %v261_v13, %v681_v8  ;;  %v265_v25 = vmul.f32 %v261_v13, %v683_v9  ;;  %v280_v32 = vmul.f32 %v279_v15, %v709_v26  ;;  %v281_v33 = vmul.f32 %v279_v15, %v711_v30 }
  0x44   :  { %v282_v35 = vmul.f32 %v279_v15, %v713_v44  ;;  %v283_v36 = vmul.f32 %v279_v15, %v715_v45  ;;  %v266_v37 = vadd.f32 %v262_v17, %v257_v34  ;;  %v267_v38 = vadd.f32 %v263_v21, %v258_v4 }
  0x45   :  { %v268_v39 = vadd.f32 %v264_v24, %v259_v11  ;;  %v269_v40 = vadd.f32 %v265_v25, %v260_v23  ;;  %v285_v2 = vmul.f32 %v284_v16, %v741_v27  ;;  %v286_v3 = vmul.f32 %v284_v16, %v743_v31 }
  0x46   :  { %v287_v8 = vmul.f32 %v284_v16, %v745_v28  ;;  %v288_v9 = vmul.f32 %v284_v16, %v747_v12  ;;  %v271_v5 = vadd.f32 %v270_v14, %v266_v37  ;;  %v272_v6 = vadd.f32 %v270_v14, %v267_v38 }
  0x47   :  { %v273_v41 = vadd.f32 %v270_v14, %v268_v39  ;;  %v274_v42 = vadd.f32 %v270_v14, %v269_v40  ;;  %v289_v7 = vadd.f32 %v285_v2, %v280_v32  ;;  %v290_v18 = vadd.f32 %v286_v3, %v281_v33 }
  0x48   :  { %v291_v43 = vadd.f32 %v287_v8, %v282_v35  ;;  %v292_v22 = vadd.f32 %v288_v9, %v283_v36  ;;  %v777_v47 = vmax.f32 %v271_v5, 0.0  ;;  %v779_v48 = vmax.f32 %v272_v6, 0.0 }
  0x49   :  { %v781_v49 = vmax.f32 %v273_v41, 0.0  ;;  %v783_v51 = vmax.f32 %v274_v42, 0.0  ;;  %v293_v52 = vstv %s737_s5  ;;  %v302_v53 = vstv %s751_s8 }
  0x4a   :  { %v307_v55 = vstv %s739_s6  ;;  %v312_v56 = vstv %s749_s7  ;;  %v294_v57 = vmul.f32 %v293_v52, %v777_v47  ;;  %v295_v46 = vmul.f32 %v293_v52, %v779_v48 }
  0x4b   :  { %v296_v50 = vmul.f32 %v293_v52, %v781_v49  ;;  %v297_v54 = vmul.f32 %v293_v52, %v783_v51  ;;  %v308_v58 = vmul.f32 %v307_v55, %v709_v26  ;;  %v309_v59 = vmul.f32 %v307_v55, %v711_v30 }
  0x4c   :  { %v310_v60 = vmul.f32 %v307_v55, %v713_v44  ;;  %v311_v61 = vmul.f32 %v307_v55, %v715_v45  ;;  %v298_v62 = vadd.f32 %v294_v57, %v289_v7  ;;  %v299_v63 = vadd.f32 %v295_v46, %v290_v18 }
  0x4d   :  { %v300_v0 = vadd.f32 %v296_v50, %v291_v43  ;;  %v301_v1 = vadd.f32 %v297_v54, %v292_v22  ;;  %v313_v10 = vmul.f32 %v312_v56, %v741_v27  ;;  %v314_v20 = vmul.f32 %v312_v56, %v743_v31 }
  0x4e   :  { %v315_v19 = vmul.f32 %v312_v56, %v745_v28  ;;  %v316_v29 = vmul.f32 %v312_v56, %v747_v12  ;;  %v303_v34 = vadd.f32 %v302_v53, %v298_v62  ;;  %v304_v4 = vadd.f32 %v302_v53, %v299_v63 }
  0x4f   :  { %v305_v11 = vadd.f32 %v302_v53, %v300_v0  ;;  %v306_v23 = vadd.f32 %v302_v53, %v301_v1  ;;  %v317_v13 = vadd.f32 %v313_v10, %v308_v58  ;;  %v318_v14 = vadd.f32 %v314_v20, %v309_v59 }
  0x50   :  { %v319_v15 = vadd.f32 %v315_v19, %v310_v60  ;;  %v320_v16 = vadd.f32 %v316_v29, %v311_v61  ;;  %v321_v17 = vstv %s769_s9  ;;  %v330_v21 = vstv %s775_s12 }
  0x51   :  { %v335_v24 = vstv %s771_s10  ;;  %v340_v25 = vstv %s773_s11  ;;  %v322_v32 = vmul.f32 %v321_v17, %v777_v47  ;;  %v323_v33 = vmul.f32 %v321_v17, %v779_v48 }
  0x52   :  { %v324_v35 = vmul.f32 %v321_v17, %v781_v49  ;;  %v325_v36 = vmul.f32 %v321_v17, %v783_v51  ;;  %v336_v37 = vmul.f32 %v335_v24, %v709_v26  ;;  %v337_v38 = vmul.f32 %v335_v24, %v711_v30 }
  0x53   :  { %v338_v39 = vmul.f32 %v335_v24, %v713_v44  ;;  %v339_v40 = vmul.f32 %v335_v24, %v715_v45  ;;  %v326_v2 = vadd.f32 %v322_v32, %v317_v13  ;;  %v327_v3 = vadd.f32 %v323_v33, %v318_v14 }
  0x54   :  { %v328_v8 = vadd.f32 %v324_v35, %v319_v15  ;;  %v329_v9 = vadd.f32 %v325_v36, %v320_v16  ;;  %v341_v5 = vmul.f32 %v340_v25, %v741_v27  ;;  %v342_v6 = vmul.f32 %v340_v25, %v743_v31 }
  0x55   :  { %v343_v41 = vmul.f32 %v340_v25, %v745_v28  ;;  %v344_v26 = vmul.f32 %v340_v25, %v747_v12  ;;  %v331_v42 = vadd.f32 %v330_v21, %v326_v2  ;;  %v332_v30 = vadd.f32 %v330_v21, %v327_v3 }
  0x56   :  { %v333_v7 = vadd.f32 %v330_v21, %v328_v8  ;;  %v334_v44 = vadd.f32 %v330_v21, %v329_v9  ;;  %v345_v18 = vadd.f32 %v341_v5, %v336_v37  ;;  %v346_v45 = vadd.f32 %v342_v6, %v337_v38 }
  0x57   :  { %v347_v43 = vadd.f32 %v343_v41, %v338_v39  ;;  %v348_v22 = vadd.f32 %v344_v26, %v339_v40  ;;  %v349_v52 = vstv %s801_s13  ;;  %v358_v53 = vstv %s803_s14 }
  0x58   :  { %v363_v55 = vmul.f32 %v303_v34, %v303_v34  ;;  %v364_v56 = vmul.f32 %v304_v4, %v304_v4  ;;  %v350_v27 = vmul.f32 %v349_v52, %v777_v47  ;;  %v351_v31 = vmul.f32 %v349_v52, %v779_v48 }
  0x59   :  { %v352_v28 = vmul.f32 %v349_v52, %v781_v49  ;;  %v353_v12 = vmul.f32 %v349_v52, %v783_v51  ;;  %v365_v57 = vmul.f32 %v305_v11, %v305_v11  ;;  %v366_v46 = vmul.f32 %v306_v23, %v306_v23 }
  0x5a   :  { %v367_v50 = vmul.f32 %v331_v42, %v331_v42  ;;  %v368_v54 = vmul.f32 %v332_v30, %v332_v30  ;;  %v354_v58 = vadd.f32 %v350_v27, %v345_v18  ;;  %v355_v59 = vadd.f32 %v351_v31, %v346_v45 }
  0x5b   :  { %v356_v60 = vadd.f32 %v352_v28, %v347_v43  ;;  %v357_v61 = vadd.f32 %v353_v12, %v348_v22  ;;  %v369_v62 = vmul.f32 %v333_v7, %v333_v7  ;;  %v370_v63 = vmul.f32 %v334_v44, %v334_v44 }
  0x5c   :  { %v371_v0 = vadd.f32 %v367_v50, %v363_v55  ;;  %v372_v1 = vadd.f32 %v368_v54, %v364_v56  ;;  %v359_v10 = vadd.f32 %v358_v53, %v354_v58  ;;  %v360_v47 = vadd.f32 %v358_v53, %v355_v59 }
  0x5d   :  { %v361_v20 = vadd.f32 %v358_v53, %v356_v60  ;;  %v362_v48 = vadd.f32 %v358_v53, %v357_v61  ;;  %v373_v19 = vadd.f32 %v369_v62, %v365_v57  ;;  %v374_v49 = vadd.f32 %v370_v63, %v366_v46 }
  0x5e   :  { %v375_v29 = vmul.f32 %v359_v10, %v359_v10  ;;  %v376_v51 = vmul.f32 %v360_v47, %v360_v47  ;;  %v403_v40 = vstv %s53_s17 }
  0x5f   :  { %v377_v34 = vmul.f32 %v361_v20, %v361_v20  ;;  %v378_v4 = vmul.f32 %v362_v48, %v362_v48 }
  0x60   :  { %v379_v11 = vadd.f32 %v375_v29, %v371_v0  ;;  %v380_v23 = vadd.f32 %v376_v51, %v372_v1 }
  0x61   :  { %v381_v13 = vadd.f32 %v377_v34, %v373_v19  ;;  %v382_v14 = vadd.f32 %v378_v4, %v374_v49 }
  0x62   :  { %v383_v15 = vadd.f32 1.0, %v379_v11  ;;  %v384_v16 = vadd.f32 1.0, %v380_v23 }
  0x63   :  { %v385_v17 = vadd.f32 1.0, %v381_v13  ;;  %v386_v21 = vadd.f32 1.0, %v382_v14 }
  0x64   :  { %474 = vrcp.f32 %v383_v15 }
  0x65   :  { %476 = vrcp.f32 %v384_v16 }
  0x66   :  { %478 = vrcp.f32 %v385_v17 }
  0x67   :  { %480 = vrcp.f32 %v386_v21 }
  0x6e   :  { %v475_v24 = vpop.eup %474 }
  0x6f   :  { %v477_v25 = vpop.eup %476  ;;  %v391_v32 = vmul.f32 %v475_v24, %v379_v11 }
  0x70   :  { %v479_v33 = vpop.eup %478  ;;  %v392_v35 = vmul.f32 %v477_v25, %v380_v23 }
  0x71   :  { %v481_v36 = vpop.eup %480  ;;  %v393_v37 = vmul.f32 %v479_v33, %v381_v13  ;;  %482 = vlog2.f32 %v391_v32 }
  0x72   :  { %v394_v38 = vmul.f32 %v481_v36, %v382_v14  ;;  %484 = vlog2.f32 %v392_v35 }
  0x73   :  { %486 = vlog2.f32 %v393_v37 }
  0x74   :  { %488 = vlog2.f32 %v394_v38 }
  0x7b   :  { %v483_v39 = vpop.eup %482 }
  0x7c   :  { %v485_v2 = vpop.eup %484  ;;  %v396_v3 = vmul.f32 0.6931472, %v483_v39 }
  0x7d   :  { %v487_v8 = vpop.eup %486  ;;  %v398_v9 = vmul.f32 0.6931472, %v485_v2 }
  0x7e   :  { %v489_v5 = vpop.eup %488  ;;  %v400_v6 = vmul.f32 0.6931472, %v487_v8  ;;  %v404_v41 = vmul.f32 %v403_v40, %v396_v3 }
  0x7f   :  { %v402_v26 = vmul.f32 0.6931472, %v489_v5  ;;  %v405_v42 = vmul.f32 %v403_v40, %v398_v9 }
  0x80   :  { %v406_v30 = vmul.f32 %v403_v40, %v400_v6  ;;  %v408_v7 = vmul.f32 1.442695, %v404_v41 }
  0x81   :  { %v407_v44 = vmul.f32 %v403_v40, %v402_v26  ;;  %v410_v18 = vmul.f32 1.442695, %v405_v42 }
  0x82   :  { %490 = vpow2.f32 %v408_v7  ;;  %v412_v45 = vmul.f32 1.442695, %v406_v30 }
  0x83   :  { %492 = vpow2.f32 %v410_v18  ;;  %v414_v43 = vmul.f32 1.442695, %v407_v44 }
  0x84   :  { %494 = vpow2.f32 %v412_v45 }
  0x85   :  { %496 = vpow2.f32 %v414_v43 }
  0x8c   :  { %v491_v22 = vpop.eup %490 }
  0x8d   :  { %v493_v52 = vpop.eup %492  ;;  %418 = vst [vmem:[%s841_s2] sm:$0xff] %v491_v22 }
  0x8e   :  { %v495_v53 = vpop.eup %494  ;;  %419 = vst [vmem:[%s841_s2 + $0x8] sm:$0xff] %v493_v52 }
  0x8f   :  { %v497_v55 = vpop.eup %496  ;;  %420 = vst [vmem:[%s841_s2 + $0x10] sm:$0xff] %v495_v53 }
  0x90   :  { %421 = vst [vmem:[%s841_s2 + $0x18] sm:$0xff] %v497_v55 }

</bundles_post_ra>
